<compile_context>
chip_gen: v7x
topology: tpu7x:2x2x1
jax: 0.10.0
libtpu: 0.0.40
codegen_flags: <defaults>
</compile_context>

<pallas_src>
import functools

import jax
import jax.numpy as jnp
from jax.experimental import pallas as pl
from jax.experimental.pallas import tpu as pltpu


# -----------------------------------------------------------------------------
# Helpers
# -----------------------------------------------------------------------------
def _round_up(x, m):
    return ((x + m - 1) // m) * m


def _pack_table_bf16x3_T(w_f32):
    """f32 table (N, D) -> (3*D, N) bf16 with hi/mid/lo components stacked.

    one-hot x bf16 products are exact, and the f32 sum of the three components
    reconstructs the original f32 entry (up to bf16-subnormal underflow), so the
    MXU gather matches a plain row gather numerically.  Done ONCE in the
    wrapper (hoisted out of the kernel per perf review).
    """
    hi = w_f32.astype(jnp.bfloat16)
    r1 = w_f32 - hi.astype(jnp.float32)
    mid = r1.astype(jnp.bfloat16)
    lo = (r1 - mid.astype(jnp.float32)).astype(jnp.bfloat16)
    return jnp.concatenate([hi.T, mid.T, lo.T], axis=0)  # (3D, N) bf16


# -----------------------------------------------------------------------------
# Fused kernel: gather (MXU one-hot) + normalize + distance, transposed layout
# -----------------------------------------------------------------------------
def _transe_fused_kernel(idx_ref, ent_ref, rel_ref, out_ref, *, d, l1_flag):
    """One batch tile.

    idx_ref : (6, TB) int32  rows = [pos_h, pos_t, pos_r, neg_h, neg_t, neg_r]
    ent_ref : (3D, E) bf16   VMEM-resident pre-split entity table (transposed)
    rel_ref : (3D, R) bf16   VMEM-resident pre-split relation table
    out_ref : (2, TB) f32    row 0 = pos score, row 1 = neg score (lane-dense)
    """
    idx = idx_ref[...]                                   # (6, TB) int32
    tb = idx.shape[1]
    n_ent = ent_ref.shape[1]
    n_rel = rel_ref.shape[1]

    # ---- entity gather: ONE (3D, E) x (E, 4*TB) one-hot matmul ----
    ent_idx = jnp.concatenate(
        [idx[0:1, :], idx[1:2, :], idx[3:4, :], idx[4:5, :]], axis=1)  # (1, 4TB)
    iota_e = jax.lax.broadcasted_iota(jnp.int32, (n_ent, 4 * tb), 0)
    onehot_e = (iota_e == ent_idx).astype(jnp.bfloat16)                # (E, 4TB)
    ge3 = jnp.dot(ent_ref[...], onehot_e,
                  preferred_element_type=jnp.float32)                  # (3D, 4TB)
    ge = ge3[0:d, :] + ge3[d:2 * d, :] + ge3[2 * d:3 * d, :]           # (D, 4TB)

    # L2-normalize all four entity sets at once (rsqrt -> EUP slot).
    ge = ge * jax.lax.rsqrt(jnp.sum(ge * ge, axis=0, keepdims=True))
    ph = ge[:, 0 * tb:1 * tb]
    pt = ge[:, 1 * tb:2 * tb]
    nh = ge[:, 2 * tb:3 * tb]
    nt = ge[:, 3 * tb:4 * tb]

    # ---- relation gather: ONE (3D, R) x (R, 2*TB) one-hot matmul ----
    rel_idx = jnp.concatenate([idx[2:3, :], idx[5:6, :]], axis=1)      # (1, 2TB)
    iota_r = jax.lax.broadcasted_iota(jnp.int32, (n_rel, 2 * tb), 0)
    onehot_r = (iota_r == rel_idx).astype(jnp.bfloat16)                # (R, 2TB)
    gr3 = jnp.dot(rel_ref[...], onehot_r,
                  preferred_element_type=jnp.float32)                  # (3D, 2TB)
    gr = gr3[0:d, :] + gr3[d:2 * d, :] + gr3[2 * d:3 * d, :]           # (D, 2TB)
    pr = gr[:, 0:tb]
    nr = gr[:, tb:2 * tb]

    pos_diff = ph + pr - pt
    neg_diff = nh + nr - nt
    if l1_flag:
        pos = jnp.sum(jnp.abs(pos_diff), axis=0, keepdims=True)        # (1, TB)
        neg = jnp.sum(jnp.abs(neg_diff), axis=0, keepdims=True)
    else:
        pos = jnp.sqrt(jnp.sum(pos_diff * pos_diff, axis=0, keepdims=True))
        neg = jnp.sqrt(jnp.sum(neg_diff * neg_diff, axis=0, keepdims=True))

    # Single lane-dense store of the whole (2, TB) block.
    out_ref[...] = jnp.concatenate([pos, neg], axis=0)


def transe_scores_fused(ent_w, rel_w, pos_h, pos_t, pos_r, neg_h, neg_t, neg_r,
                        *, l1_flag: bool, tile_b: int = 128):
    """Fused gather + score.  Requires tables small enough to live in VMEM."""
    B = pos_h.shape[0]
    E, D = ent_w.shape
    R = rel_w.shape[0]

    # Tile is a multiple of 128 (lane-dense output, MXU-friendly N dim).
    # Default 128 keeps >=2 grid steps for moderate batches (v7x megacore).
    tb = min(_round_up(tile_b, 128), _round_up(B, 128))
    b_pad = _round_up(B, tb)

    # Pack the six index vectors into one (6, B_pad) int32 array: one DMA/tile.
    idx = jnp.stack([pos_h, pos_t, pos_r, neg_h, neg_t, neg_r],
                    axis=0).astype(jnp.int32)
    idx = jnp.pad(idx, ((0, 0), (0, b_pad - B)))          # pad with valid idx 0

    # Pre-split + transpose the tables ONCE in the wrapper.
    ent_packed = _pack_table_bf16x3_T(ent_w)               # (3D, E) bf16
    rel_packed = _pack_table_bf16x3_T(rel_w)               # (3D, R) bf16

    idx_spec = pl.BlockSpec((6, tb), lambda i: (0, i))
    ent_spec = pl.BlockSpec((3 * D, E), lambda i: (0, 0))  # constant -> resident
    rel_spec = pl.BlockSpec((3 * D, R), lambda i: (0, 0))
    out_spec = pl.BlockSpec((2, tb), lambda i: (0, i))

    kernel = functools.partial(_transe_fused_kernel, d=D, l1_flag=l1_flag)
    out = pl.pallas_call(
        kernel,
        out_shape=jax.ShapeDtypeStruct((2, b_pad), jnp.float32),
        grid_spec=pltpu.PrefetchScalarGridSpec(
            num_scalar_prefetch=0,
            grid=(b_pad // tb,),
            in_specs=[idx_spec, ent_spec, rel_spec],
            out_specs=out_spec,
        ),
        compiler_params=pltpu.CompilerParams(
            dimension_semantics=("parallel",)),
    )(idx, ent_packed, rel_packed)

    return out[0, :B], out[1, :B]


# -----------------------------------------------------------------------------
# Fallback kernel: pre-gathered (B, D) embeddings, tiled normalize + distance
# -----------------------------------------------------------------------------
def _l2_normalize_rows(x):
    ssq = jnp.sum(x * x, axis=1, keepdims=True)
    return x * jax.lax.rsqrt(ssq)


def _transe_tiled_kernel(ph_ref, pt_ref, pr_ref, nh_ref, nt_ref, nr_ref,
                         out_ref, *, l1_flag: bool):
    ph = _l2_normalize_rows(ph_ref[...])
    pt = _l2_normalize_rows(pt_ref[...])
    nh = _l2_normalize_rows(nh_ref[...])
    nt = _l2_normalize_rows(nt_ref[...])
    pos_diff = ph + pr_ref[...] - pt
    neg_diff = nh + nr_ref[...] - nt
    if l1_flag:
        pos = jnp.sum(jnp.abs(pos_diff), axis=1, keepdims=True)
        neg = jnp.sum(jnp.abs(neg_diff), axis=1, keepdims=True)
    else:
        pos = jnp.sqrt(jnp.sum(pos_diff * pos_diff, axis=1, keepdims=True))
        neg = jnp.sqrt(jnp.sum(neg_diff * neg_diff, axis=1, keepdims=True))
    out_ref[:, 0:1] = pos
    out_ref[:, 1:2] = neg


def transe_scores_pregathered(pos_h_e, pos_t_e, pos_r_e, neg_h_e, neg_t_e,
                              neg_r_e, *, l1_flag: bool, tile_b: int = 1024):
    """Tiled normalization + distance over pre-gathered (B, D) embeddings.

    HBM-bandwidth bound: use large tiles (6 double-buffered input blocks kept
    within a ~24 MiB budget) and an explicit VMEM limit.
    """
    B, D = pos_h_e.shape

    vmem_budget = 24 * 1024 * 1024
    tb_cap = max(8, (vmem_budget // (6 * 2 * D * 4)) // 8 * 8)
    tb = min(_round_up(tile_b, 8), tb_cap, _round_up(B, 8))
    b_pad = _round_up(B, tb)

    def prep(e):
        # pad rows with 1.0 so padded rows normalize without NaN
        return jnp.pad(e, ((0, b_pad - B), (0, 0)), constant_values=1.0)

    embs = [prep(e) for e in (pos_h_e, pos_t_e, pos_r_e,
                              neg_h_e, neg_t_e, neg_r_e)]

    emb_spec = pl.BlockSpec((tb, D), lambda i: (i, 0))
    out_spec = pl.BlockSpec((tb, 2), lambda i: (i, 0))

    kernel = functools.partial(_transe_tiled_kernel, l1_flag=l1_flag)
    out = pl.pallas_call(
        kernel,
        out_shape=jax.ShapeDtypeStruct((b_pad, 2), jnp.float32),
        grid_spec=pltpu.PrefetchScalarGridSpec(
            num_scalar_prefetch=0,
            grid=(b_pad // tb,),
            in_specs=[emb_spec] * 6,
            out_specs=out_spec,
        ),
        compiler_params=pltpu.CompilerParams(
            dimension_semantics=("parallel",),
            vmem_limit_bytes=40 * 1024 * 1024),
    )(*embs)

    return out[:B, 0], out[:B, 1]


# -----------------------------------------------------------------------------
# TransE model (parameter setup in plain JAX, mirroring the torch module)
# -----------------------------------------------------------------------------
def xavier_uniform(key, shape):
    limit = jnp.sqrt(6.0 / (shape[0] + shape[1]))
    return jax.random.uniform(key, shape, jnp.float32, -limit, limit)


def init_transe_params(key, entity_total, relation_total, embedding_size):
    k_ent, k_rel = jax.random.split(key)
    ent_w = xavier_uniform(k_ent, (entity_total, embedding_size))
    rel_w = xavier_uniform(k_rel, (relation_total, embedding_size))
    # Mirrors torch: rel_weight /= row-norm, then F.normalize both.
    rel_w = rel_w / jnp.linalg.norm(rel_w, axis=1, keepdims=True)
    ent_w = ent_w / jnp.linalg.norm(ent_w, axis=1, keepdims=True)
    rel_w = rel_w / jnp.linalg.norm(rel_w, axis=1, keepdims=True)
    return ent_w, rel_w


def transe_forward(ent_w, rel_w, pos_h, pos_t, pos_r, neg_h, neg_t, neg_r,
                   *, l1_flag: bool, fuse_gather=None):
    E, D = ent_w.shape
    R = rel_w.shape[0]
    if fuse_gather is None:
        packed_bytes = 6 * D * (E + R) * 2      # two bf16x3-packed tables
        fuse_gather = (E + R) <= 2048 and packed_bytes <= 4 * 1024 * 1024

    if fuse_gather:
        return transe_scores_fused(ent_w, rel_w, pos_h, pos_t, pos_r,
                                   neg_h, neg_t, neg_r, l1_flag=l1_flag)

    # Fallback: XLA-level gather, Pallas kernel does normalize + distance.
    # TODO(synk): move this gather into the kernel (scalar-prefetched indices +
    # manual DMA from pl.ANY HBM tables) to drop the extra HBM round trip.
    pos_h_e = jnp.take(ent_w, pos_h, axis=0)
    pos_t_e = jnp.take(ent_w, pos_t, axis=0)
    pos_r_e = jnp.take(rel_w, pos_r, axis=0)
    neg_h_e = jnp.take(ent_w, neg_h, axis=0)
    neg_t_e = jnp.take(ent_w, neg_t, axis=0)
    neg_r_e = jnp.take(rel_w, neg_r, axis=0)
    return transe_scores_pregathered(pos_h_e, pos_t_e, pos_r_e,
                                     neg_h_e, neg_t_e, neg_r_e,
                                     l1_flag=l1_flag)


# Pure-JAX reference for correctness checks.
def transe_forward_ref(ent_w, rel_w, pos_h, pos_t, pos_r, neg_h, neg_t, neg_r,
                       *, l1_flag: bool):
    def nrm(x):
        return x / jnp.linalg.norm(x, axis=1, keepdims=True)
    ph = nrm(jnp.take(ent_w, pos_h, axis=0))
    pt = nrm(jnp.take(ent_w, pos_t, axis=0))
    pr = jnp.take(rel_w, pos_r, axis=0)
    nh = nrm(jnp.take(ent_w, neg_h, axis=0))
    nt = nrm(jnp.take(ent_w, neg_t, axis=0))
    nr = jnp.take(rel_w, neg_r, axis=0)
    if l1_flag:
        pos = jnp.sum(jnp.abs(ph + pr - pt), axis=1)
        neg = jnp.sum(jnp.abs(nh + nr - nt), axis=1)
    else:
        pos = jnp.sqrt(jnp.sum((ph + pr - pt) ** 2, axis=1))
        neg = jnp.sqrt(jnp.sum((nh + nr - nt) ** 2, axis=1))
    return pos, neg


if __name__ == "__main__":
    entity_total = 32
    relation_total = 8
    embedding_size = 32
    batch_size = 8

    key = jax.random.PRNGKey(0)
    k_param, k_ph, k_pt, k_pr, k_nh, k_nt, k_nr = jax.random.split(key, 7)

    ent_w, rel_w = init_transe_params(
        k_param, entity_total, relation_total, embedding_size)

    pos_h = jax.random.randint(k_ph, (batch_size,), 0, entity_total, jnp.int32)
    pos_t = jax.random.randint(k_pt, (batch_size,), 0, entity_total, jnp.int32)
    pos_r = jax.random.randint(k_pr, (batch_size,), 0, relation_total, jnp.int32)
    neg_h = jax.random.randint(k_nh, (batch_size,), 0, entity_total, jnp.int32)
    neg_t = jax.random.randint(k_nt, (batch_size,), 0, entity_total, jnp.int32)
    neg_r = jax.random.randint(k_nr, (batch_size,), 0, relation_total, jnp.int32)

    # Fused-gather path, both L1 and L2 scoring.
    for l1_flag in (True, False):
        pos, neg = transe_forward(ent_w, rel_w, pos_h, pos_t, pos_r,
                                  neg_h, neg_t, neg_r, l1_flag=l1_flag)
        jax.block_until_ready((pos, neg))
        pos_ref, neg_ref = transe_forward_ref(ent_w, rel_w, pos_h, pos_t, pos_r,
                                              neg_h, neg_t, neg_r,
                                              l1_flag=l1_flag)
        assert pos.shape == (batch_size,) and neg.shape == (batch_size,)
        assert jnp.allclose(pos, pos_ref, atol=1e-4, rtol=1e-4)
        assert jnp.allclose(neg, neg_ref, atol=1e-4, rtol=1e-4)

    # Pre-gathered fallback path (used for tables too large for VMEM).
    pos, neg = transe_forward(ent_w, rel_w, pos_h, pos_t, pos_r,
                              neg_h, neg_t, neg_r, l1_flag=True,
                              fuse_gather=False)
    jax.block_until_ready((pos, neg))
    pos_ref, neg_ref = transe_forward_ref(ent_w, rel_w, pos_h, pos_t, pos_r,
                                          neg_h, neg_t, neg_r, l1_flag=True)
    assert jnp.allclose(pos, pos_ref, atol=1e-4, rtol=1e-4)
    assert jnp.allclose(neg, neg_ref, atol=1e-4, rtol=1e-4)

    print("KERNEL_OK")
</pallas_src>

<mosaic_0001>
module attributes {stable_mosaic.version = 11 : i64} {
  func.func @_transe_fused_kernel(%arg0: i32, %arg1: memref<6x128xi32, #tpu.memory_space<vmem>>, %arg2: memref<96x32xbf16, #tpu.memory_space<vmem>>, %arg3: memref<96x8xbf16, #tpu.memory_space<vmem>>, %arg4: memref<2x128xf32, #tpu.memory_space<vmem>>) attributes {dimension_semantics = [#tpu.dimension_semantics<parallel>], iteration_bounds = array<i64: 1>, scalar_prefetch = 0 : i64, scratch_operands = 0 : i64, tpu.core_type = #tpu.core_type<tc>, window_params = [{transform_indices = @transform_0, window_bounds = array<i64: 6, 128>}, {pipeline_mode = #tpu.pipeline_mode<synchronous>, transform_indices = @transform_1, window_bounds = array<i64: 96, 32>}, {pipeline_mode = #tpu.pipeline_mode<synchronous>, transform_indices = @transform_2, window_bounds = array<i64: 96, 8>}, {transform_indices = @transform_3, window_bounds = array<i64: 2, 128>}]} {
    %c0 = arith.constant 0 : index
    %c0_0 = arith.constant 0 : index
    %0 = vector.load %arg1[%c0, %c0_0] : memref<6x128xi32, #tpu.memory_space<vmem>>, vector<6x128xi32>
    %1 = vector.extract_strided_slice %0 {offsets = [0, 0], sizes = [1, 128], strides = [1, 1]} : vector<6x128xi32> to vector<1x128xi32>
    %2 = vector.extract_strided_slice %0 {offsets = [1, 0], sizes = [1, 128], strides = [1, 1]} : vector<6x128xi32> to vector<1x128xi32>
    %3 = vector.extract_strided_slice %0 {offsets = [3, 0], sizes = [1, 128], strides = [1, 1]} : vector<6x128xi32> to vector<1x128xi32>
    %4 = vector.extract_strided_slice %0 {offsets = [4, 0], sizes = [1, 128], strides = [1, 1]} : vector<6x128xi32> to vector<1x128xi32>
    %5 = tpu.concatenate %1, %2, %3, %4 in 1 : vector<1x128xi32>, vector<1x128xi32>, vector<1x128xi32>, vector<1x128xi32> -> vector<1x512xi32>
    %6 = tpu.iota {dimensions = array<i32: 0>} : vector<32x512xi32>
    %7 = vector.broadcast %5 : vector<1x512xi32> to vector<32x512xi32>
    %8 = arith.cmpi eq, %6, %7 : vector<32x512xi32>
    %9 = arith.extui %8 : vector<32x512xi1> to vector<32x512xi32>
    %10 = arith.sitofp %9 : vector<32x512xi32> to vector<32x512xf32>
    %11 = arith.truncf %10 : vector<32x512xf32> to vector<32x512xbf16>
    %c0_1 = arith.constant 0 : index
    %c0_2 = arith.constant 0 : index
    %12 = vector.load %arg2[%c0_1, %c0_2] : memref<96x32xbf16, #tpu.memory_space<vmem>>, vector<96x32xbf16>
    %cst = arith.constant dense<0.000000e+00> : vector<96x512xf32>
    %13 = tpu.matmul %12, %11, %cst {dimension_numbers = #tpu.dot_dimension_numbers<[1], [0], [0], [1], [0, 0, 1, 1], [], []>} : vector<96x32xbf16>, vector<32x512xbf16>, vector<96x512xf32> -> vector<96x512xf32>
    %14 = vector.extract_strided_slice %13 {offsets = [0, 0], sizes = [32, 512], strides = [1, 1]} : vector<96x512xf32> to vector<32x512xf32>
    %15 = vector.extract_strided_slice %13 {offsets = [32, 0], sizes = [32, 512], strides = [1, 1]} : vector<96x512xf32> to vector<32x512xf32>
    %16 = arith.addf %14, %15 : vector<32x512xf32>
    %17 = vector.extract_strided_slice %13 {offsets = [64, 0], sizes = [32, 512], strides = [1, 1]} : vector<96x512xf32> to vector<32x512xf32>
    %18 = arith.addf %16, %17 : vector<32x512xf32>
    %19 = arith.mulf %18, %18 : vector<32x512xf32>
    %cst_3 = arith.constant dense<0.000000e+00> : vector<512xf32>
    %20 = vector.multi_reduction <add>, %19, %cst_3 [0] : vector<32x512xf32> to vector<512xf32>
    %21 = vector.shape_cast %20 : vector<512xf32> to vector<1x512xf32>
    %22 = math.rsqrt %21 : vector<1x512xf32>
    %23 = vector.broadcast %22 : vector<1x512xf32> to vector<32x512xf32>
    %24 = arith.mulf %18, %23 : vector<32x512xf32>
    %25 = vector.extract_strided_slice %24 {offsets = [0, 0], sizes = [32, 128], strides = [1, 1]} : vector<32x512xf32> to vector<32x128xf32>
    %26 = vector.extract_strided_slice %24 {offsets = [0, 128], sizes = [32, 128], strides = [1, 1]} : vector<32x512xf32> to vector<32x128xf32>
    %27 = vector.extract_strided_slice %24 {offsets = [0, 256], sizes = [32, 128], strides = [1, 1]} : vector<32x512xf32> to vector<32x128xf32>
    %28 = vector.extract_strided_slice %24 {offsets = [0, 384], sizes = [32, 128], strides = [1, 1]} : vector<32x512xf32> to vector<32x128xf32>
    %29 = vector.extract_strided_slice %0 {offsets = [2, 0], sizes = [1, 128], strides = [1, 1]} : vector<6x128xi32> to vector<1x128xi32>
    %30 = vector.extract_strided_slice %0 {offsets = [5, 0], sizes = [1, 128], strides = [1, 1]} : vector<6x128xi32> to vector<1x128xi32>
    %31 = tpu.concatenate %29, %30 in 1 : vector<1x128xi32>, vector<1x128xi32> -> vector<1x256xi32>
    %32 = tpu.iota {dimensions = array<i32: 0>} : vector<8x256xi32>
    %33 = vector.broadcast %31 : vector<1x256xi32> to vector<8x256xi32>
    %34 = arith.cmpi eq, %32, %33 : vector<8x256xi32>
    %35 = arith.extui %34 : vector<8x256xi1> to vector<8x256xi32>
    %36 = arith.sitofp %35 : vector<8x256xi32> to vector<8x256xf32>
    %37 = arith.truncf %36 : vector<8x256xf32> to vector<8x256xbf16>
    %c0_4 = arith.constant 0 : index
    %c0_5 = arith.constant 0 : index
    %38 = vector.load %arg3[%c0_4, %c0_5] : memref<96x8xbf16, #tpu.memory_space<vmem>>, vector<96x8xbf16>
    %cst_6 = arith.constant dense<0.000000e+00> : vector<96x256xf32>
    %39 = tpu.matmul %38, %37, %cst_6 {dimension_numbers = #tpu.dot_dimension_numbers<[1], [0], [0], [1], [0, 0, 1, 1], [], []>} : vector<96x8xbf16>, vector<8x256xbf16>, vector<96x256xf32> -> vector<96x256xf32>
    %40 = vector.extract_strided_slice %39 {offsets = [0, 0], sizes = [32, 256], strides = [1, 1]} : vector<96x256xf32> to vector<32x256xf32>
    %41 = vector.extract_strided_slice %39 {offsets = [32, 0], sizes = [32, 256], strides = [1, 1]} : vector<96x256xf32> to vector<32x256xf32>
    %42 = arith.addf %40, %41 : vector<32x256xf32>
    %43 = vector.extract_strided_slice %39 {offsets = [64, 0], sizes = [32, 256], strides = [1, 1]} : vector<96x256xf32> to vector<32x256xf32>
    %44 = arith.addf %42, %43 : vector<32x256xf32>
    %45 = vector.extract_strided_slice %44 {offsets = [0, 0], sizes = [32, 128], strides = [1, 1]} : vector<32x256xf32> to vector<32x128xf32>
    %46 = vector.extract_strided_slice %44 {offsets = [0, 128], sizes = [32, 128], strides = [1, 1]} : vector<32x256xf32> to vector<32x128xf32>
    %47 = arith.addf %25, %45 : vector<32x128xf32>
    %48 = arith.subf %47, %26 : vector<32x128xf32>
    %49 = arith.addf %27, %46 : vector<32x128xf32>
    %50 = arith.subf %49, %28 : vector<32x128xf32>
    %51 = math.absf %48 : vector<32x128xf32>
    %cst_7 = arith.constant dense<0.000000e+00> : vector<128xf32>
    %52 = vector.multi_reduction <add>, %51, %cst_7 [0] : vector<32x128xf32> to vector<128xf32>
    %53 = vector.shape_cast %52 : vector<128xf32> to vector<1x128xf32>
    %54 = math.absf %50 : vector<32x128xf32>
    %cst_8 = arith.constant dense<0.000000e+00> : vector<128xf32>
    %55 = vector.multi_reduction <add>, %54, %cst_8 [0] : vector<32x128xf32> to vector<128xf32>
    %56 = vector.shape_cast %55 : vector<128xf32> to vector<1x128xf32>
    %57 = tpu.concatenate %53, %56 in 0 : vector<1x128xf32>, vector<1x128xf32> -> vector<2x128xf32>
    %c0_9 = arith.constant 0 : index
    %c0_10 = arith.constant 0 : index
    %58 = vector.load %arg4[%c0_9, %c0_10] : memref<2x128xf32, #tpu.memory_space<vmem>>, vector<2x128xf32>
    tpu.vector_store %arg4[%c0_9, %c0_10], %57 {strides = array<i32>} : memref<2x128xf32, #tpu.memory_space<vmem>>, vector<2x128xf32>,
    return
  }
  func.func @transform_0(%arg0: i32) -> (i32, i32) {
    %c0_i32 = arith.constant 0 : i32
    %c0_i32_0 = arith.constant 0 : i32
    return %c0_i32, %arg0 : i32, i32
  }
  func.func @transform_1(%arg0: i32) -> (i32, i32) {
    %c0_i32 = arith.constant 0 : i32
    %c0_i32_0 = arith.constant 0 : i32
    %c0_i32_1 = arith.constant 0 : i32
    return %c0_i32, %c0_i32_0 : i32, i32
  }
  func.func @transform_2(%arg0: i32) -> (i32, i32) {
    %c0_i32 = arith.constant 0 : i32
    %c0_i32_0 = arith.constant 0 : i32
    %c0_i32_1 = arith.constant 0 : i32
    return %c0_i32, %c0_i32_0 : i32, i32
  }
  func.func @transform_3(%arg0: i32) -> (i32, i32) {
    %c0_i32 = arith.constant 0 : i32
    %c0_i32_0 = arith.constant 0 : i32
    return %c0_i32, %arg0 : i32, i32
  }
}

</mosaic_0001>

<bundles_post_ra>
// kernel: tpu_custom_call.1
= control target key start
LH: loop header
LB: loop body
LE: loop exit
PB: predicated region body
PF: predicated region fallthrough
CT: control target
= control target key end

     0   :  { %v20_v1 = vlaneseq  ;;  %v865_v2 = vmov 0   ;;  %v866_v16 = vmov 1.0|1.0   ;;  %v867_v21 = vmov 0.0   ;;  %s986_s0 = inlined_call_operand.vmem [shape: s32[6,128], index: 0, kind: input, shape index: {}]   ;;  %s987_s1 = inlined_call_operand.vmem [shape: bf16[96,32], index: 1, kind: input, shape index: {}]   ;;  %s988_s2 = inlined_call_operand.vmem [shape: bf16[96,8], index: 2, kind: input, shape index: {}]   ;;  %s989_s3 = inlined_call_operand.hbm [shape: f32[2,128], index: 3, kind: output, shape index: {}]  }
   0x1   :  { %v16_v0 = vld [vmem:[%s986_s0] sm:$0x3f]  ;;  %190 = vmatprep.mubr.bf16.mxu0 %v865_v2  ;;  %220 = vmatprep.mubr.bf16.mxu1 %v865_v2  ;;  %v822_v20 = vld [vmem:[%s987_s1 + $0x18] sm:$0xff]  }
   0x2   :  { %v17_v3 = vrot.slane %v16_v0, 1  ;;  %v21_v4 = vshrl.u32 %v20_v1, 7  ;;  %v19_v5 = vrot.slane %v16_v0, 4  ;;  %v18_v6 = vrot.slane %v16_v0, 3  ;;  %v821_v19 = vld [vmem:[%s987_s1] sm:$0xff]  }
   0x4   :  { %v22_v7 = vadd.s32 8, %v21_v4  ;;  %v27_v8 = vsub.s32 0, %v21_v4  ;;  %v23_v9 = vadd.s32 16, %v21_v4  ;;  %v24_v10 = vadd.s32 24, %v21_v4 }
   0x5   :  { %v450_v15 = vsub.s32 2, %v21_v4 }
   0x6   :  { %v32_v11 = vrot.slane %v17_v3, %v27_v8  ;;  %v28_v12 = vrot.slane %v16_v0, %v27_v8  ;;  %v40_v13 = vrot.slane %v19_v5, %v27_v8  ;;  %v36_v14 = vrot.slane %v18_v6, %v27_v8 }
   0x7   :  { %v455_v17 = vrot.slane %v18_v6, %v450_v15  ;;  %v451_v18 = vrot.slane %v16_v0, %v450_v15 }
   0x8   :  { %vm42_vm0 = vcmp.eq.s32.totalorder %v21_v4, %v32_v11  ;;  %vm46_vm1 = vcmp.eq.s32.totalorder %v22_v7, %v32_v11  ;;  %vm41_vm2 = vcmp.eq.s32.totalorder %v21_v4, %v28_v12  ;;  %vm45_vm3 = vcmp.eq.s32.totalorder %v22_v7, %v28_v12 }
   0x9   :  { %vm722_vm4 = vmpackc.low %vm46_vm1, %vm42_vm0  ;;  %vm50_vm5 = vcmp.eq.s32.totalorder %v23_v9, %v32_v11  ;;  %vm54_vm6 = vcmp.eq.s32.totalorder %v24_v10, %v32_v11  ;;  %vm49_vm7 = vcmp.eq.s32.totalorder %v23_v9, %v28_v12  ;;  %vm53_vm8 = vcmp.eq.s32.totalorder %v24_v10, %v28_v12 }
   0xa   :  { %723 = vmatprep.subr.msk.bf16.mxu0 %vm722_vm4, %v866_v16  ;;  %765 = vmatprep.subr.msk.bf16.mxu1 %vm722_vm4, %v866_v16  ;;  %vm724_vm9 = vmpackc.low %vm45_vm3, %vm41_vm2  ;;  %vm44_vm10 = vcmp.eq.s32.totalorder %v21_v4, %v40_v13  ;;  %vm48_vm11 = vcmp.eq.s32.totalorder %v22_v7, %v40_v13  ;;  %vm43_vm14 = vcmp.eq.s32.totalorder %v21_v4, %v36_v14  ;;  %vm139_vm3 = vcmask 261120  }
   0xb   :  { %725 = vmatpush1.bf16.msk.msra.mxu0 %vm724_vm9, %v866_v16  ;;  %767 = vmatpush1.bf16.msk.msra.mxu1 %vm724_vm9, %v866_v16  ;;  %vm726_vm12 = vmpackc.low %vm54_vm6, %vm50_vm5  ;;  %vm47_vm15 = vcmp.eq.s32.totalorder %v22_v7, %v36_v14  ;;  %vm52_vm1 = vcmp.eq.s32.totalorder %v23_v9, %v40_v13  ;;  %vm56_vm4 = vcmp.eq.s32.totalorder %v24_v10, %v40_v13 }
   0xc   :  { %727 = vmatprep.subr.msk.bf16.mxu0 %vm726_vm12, %v866_v16  ;;  %766 = vmatprep.subr.msk.bf16.mxu1 %vm726_vm12, %v866_v16  ;;  %vm728_vm13 = vmpackc.low %vm53_vm8, %vm49_vm7  ;;  %vm457_vm2 = vcmp.eq.s32.totalorder %v21_v4, %v455_v17  ;;  %vm456_vm6 = vcmp.eq.s32.totalorder %v21_v4, %v451_v18  ;;  %vm525_vm8 = vcmask 1043456   ;;  %vm51_vm9 = vcmp.eq.s32.totalorder %v23_v9, %v36_v14 }
   0xd   :  { %vm736_vm0 = vmpackc.low %vm48_vm11, %vm44_vm10  ;;  %v751_v22 = vsel %vm457_vm2, 1.0, %v867_v21  ;;  %v750_v23 = vsel %vm456_vm6, 1.0, %v867_v21  ;;  %vm55_vm10 = vcmp.eq.s32.totalorder %v24_v10, %v36_v14 }
   0xe   :  { %vm738_vm5 = vmpackc.low %vm47_vm15, %vm43_vm14  ;;  %v463_v24 = vpack.c.bf16 %v751_v22, %v751_v22  ;;  %v462_v25 = vpack.c.bf16 %v750_v23, %v750_v23 }
   0xf   :  { %729 = vmatpush1.bf16.msk.msra.mxu0 %vm728_vm13, %v866_v16  ;;  %768 = vmatpush1.bf16.msk.msra.mxu1 %vm728_vm13, %v866_v16  ;;  %vm740_vm7 = vmpackc.low %vm56_vm4, %vm52_vm1 }
  0x10   :  { %737 = vmatprep.subr.msk.bf16.mxu1 %vm736_vm0, %v866_v16 }
  0x11   :  { %8 = vsyncpa [#allocation3], 0  ;;  %v527_v26 = vsel %vm525_vm8, %v462_v25, 0  ;;  %758 = vmatprep.subr.msk.bf16.mxu0 %vm525_vm8, %v463_v24  ;;  %v823_v27 = vld [vmem:[%s987_s1 + $0x8] sm:$0xff]   ;;  %v824_v28 = vld [vmem:[%s987_s1 + $0x20] sm:$0xff]   ;;  %vm506_vm12 = vcmask 64512  }
  0x12   :  { %730 = vmatmul.mubr.msk.bf16.vlgmr.msra.gmra.mrb[0].mxu0 %vm139_vm3, %v821_v19  ;;  %733 = vmatmul.mubr.msk.bf16.vlgmr.msra.gmra.mrb[0].mxu1 %vm139_vm3, %v822_v20  ;;  %vm742_vm11 = vmpackc.low %vm55_vm10, %vm51_vm9  ;;  %v825_v29 = vld [vmem:[%s987_s1 + $0x10] sm:$0xff]   ;;  %v826_v30 = vld [vmem:[%s987_s1 + $0x28] sm:$0xff]   ;;  %vm683_vm13 = vcmask 1040384  }
  0x13   :  { %739 = vmatpush1.bf16.msk.msra.mxu1 %vm738_vm5, %v866_v16  ;;  %200 = vmatprep.mubr.bf16.mxu0 %v865_v2  ;;  %v827_v31 = vld [vmem:[%s988_s2] sm:$0xff]   ;;  %v828_v32 = vld [vmem:[%s988_s2 + $0x8] sm:$0xff]   ;;  %v829_v33 = vld [vmem:[%s988_s2 + $0x10] sm:$0xff]  }
  0x14   :  { %230 = vmatprep.mubr.bf16.mxu1 %v865_v2  ;;  %741 = vmatprep.subr.msk.bf16.mxu1 %vm740_vm7, %v866_v16  ;;  %v830_v34 = vld [vmem:[%s988_s2 + $0x18] sm:$0xff]   ;;  %v831_v35 = vld [vmem:[%s988_s2 + $0x20] sm:$0xff]   ;;  %v832_v36 = vld [vmem:[%s988_s2 + $0x28] sm:$0xff]   ;;  %s868_s2 = smov [#allocation2]  }
  0x15   :  { %533 = vmatpush1.bf16.msra.mxu0 %v527_v26  ;;  %s692_s9 = sshll.u32 %s868_s2, 4  ;;  %s693_s9 = int_to_ptr.vmem [resolvable:$true] %s692_s9 }
  0x16   :  { %s841_s10 = scalar_lea.vmem %s693_s9, 32  ;;  %p846_p1 = scmp.lt.s32.totalorder %s693_s9, %s693_s9 }
  0x17   :  { %743 = vmatpush1.bf16.msk.msra.mxu1 %vm742_vm11, %v866_v16  ;;  %p842_p0 = scmp.ne.s32.totalorder %s693_s9, %s841_s10  ;;  %p847_p2 = scmp.lt.s32.totalorder %s841_s10, %s841_s10 }
  0x19   :  { %p848_p3 = por %p847_p2, %p846_p1 }
  0x1a   :  { %731 = vmatmul.mubr.msk.bf16.gmra.mrb[4].mxu0 %vm139_vm3, %v823_v27  ;;  %734 = vmatmul.mubr.msk.bf16.gmra.mrb[4].mxu1 %vm139_vm3, %v824_v28 }
  0x1b   :  { %210 = vmatprep.mubr.bf16.mxu0 %v865_v2  ;;  %240 = vmatprep.mubr.bf16.mxu1 %v865_v2  ;;  %p849_p4 = pnand %p848_p3, %p842_p0 }
  0x22   :  { %732 = vmatmul.mubr.msk.bf16.gmra.mrb[0].mxu0 %vm139_vm3, %v825_v29  ;;  %735 = vmatmul.mubr.msk.bf16.gmra.mrb[0].mxu1 %vm139_vm3, %v826_v30 }
  0x23   :  { %283 = vmatprep.mubr.bf16.mxu1 %v865_v2  ;;  %564 = vmatprep.mubr.bf16.mxu0 %v865_v2 }
  0x2a   :  { %744 = vmatmul.mubr.msk.bf16.vlgmr.msra.gmra.mrb[8].mxu1 %vm139_vm3, %v821_v19  ;;  %759 = vmatmul.mubr.msk.bf16.vlgmr.msra.gmra.mrb[8].mxu0 %vm506_vm12, %v827_v31 }
  0x2b   :  { %293 = vmatprep.mubr.bf16.mxu1 %v865_v2  ;;  %574 = vmatprep.mubr.bf16.mxu0 %v865_v2 }
  0x32   :  { %745 = vmatmul.mubr.msk.bf16.gmra.mrb[12].mxu1 %vm139_vm3, %v823_v27  ;;  %760 = vmatmul.mubr.msk.bf16.gmra.mrb[12].mxu0 %vm506_vm12, %v828_v32 }
  0x33   :  { %303 = vmatprep.mubr.bf16.mxu1 %v865_v2  ;;  %584 = vmatprep.mubr.bf16.mxu0 %v865_v2 }
  0x3a   :  { %746 = vmatmul.mubr.msk.bf16.gmra.mrb[8].mxu1 %vm139_vm3, %v825_v29  ;;  %761 = vmatmul.mubr.msk.bf16.gmra.mrb[8].mxu0 %vm506_vm12, %v829_v33 }
  0x3b   :  { %313 = vmatprep.mubr.bf16.mxu1 %v865_v2  ;;  %594 = vmatprep.mubr.bf16.mxu0 %v865_v2 }
  0x42   :  { %747 = vmatmul.mubr.msk.bf16.gmra.mrb[12].mxu1 %vm139_vm3, %v822_v20  ;;  %762 = vmatmul.mubr.msk.bf16.gmra.mrb[12].mxu0 %vm506_vm12, %v830_v34 }
  0x43   :  { %323 = vmatprep.mubr.bf16.mxu1 %v865_v2  ;;  %604 = vmatprep.mubr.bf16.mxu0 %v865_v2 }
  0x4a   :  { %748 = vmatmul.mubr.msk.bf16.gmra.mrb[8].mxu1 %vm139_vm3, %v824_v28  ;;  %763 = vmatmul.mubr.msk.bf16.gmra.mrb[8].mxu0 %vm506_vm12, %v831_v35 }
  0x4b   :  { %333 = vmatprep.mubr.bf16.mxu1 %v865_v2  ;;  %614 = vmatprep.mubr.bf16.mxu0 %v865_v2 }
  0x52   :  { %749 = vmatmul.mubr.msk.bf16.gmra.mrb[12].mxu1 %vm139_vm3, %v826_v30  ;;  %764 = vmatmul.mubr.msk.bf16.gmra.mrb[12].mxu0 %vm506_vm12, %v832_v36 }
  0xed   :  { %v232_v37 = vpop.f32.mrb[4].mxu1  ;;  %v202_v38 = vpop.f32.mrb[4].mxu0 }
  0xee   :  { %v234_v39 = vpop.f32.mrb[5].mxu1  ;;  %v204_v40 = vpop.f32.mrb[5].mxu0 }
  0xef   :  { %v236_v41 = vpop.f32.mrb[6].mxu1  ;;  %v206_v42 = vpop.f32.mrb[6].mxu0 }
  0xf0   :  { %v238_v43 = vpop.f32.mrb[7].mxu1  ;;  %v208_v44 = vpop.f32.mrb[7].mxu0 }
  0xf5   :  { %v212_v45 = vpop.f32.mrb[0].mxu0  ;;  %v242_v46 = vpop.f32.mrb[0].mxu1 }
  0xf6   :  { %v769_v47 = vadd.f32 %v232_v37, %v212_v45  ;;  %v773_v48 = vadd.f32 %v242_v46, %v202_v38  ;;  %v214_v49 = vpop.f32.mrb[1].mxu0  ;;  %v244_v50 = vpop.f32.mrb[1].mxu1 }
  0xf7   :  { %v770_v51 = vadd.f32 %v234_v39, %v214_v49  ;;  %v774_v52 = vadd.f32 %v244_v50, %v204_v40  ;;  %v216_v53 = vpop.f32.mrb[2].mxu0  ;;  %v246_v54 = vpop.f32.mrb[2].mxu1 }
  0xf8   :  { %v771_v55 = vadd.f32 %v236_v41, %v216_v53  ;;  %v775_v56 = vadd.f32 %v246_v54, %v206_v42  ;;  %v218_v57 = vpop.f32.mrb[3].mxu0  ;;  %v248_v58 = vpop.f32.mrb[3].mxu1  ;;  %v376_v61 = vmul.f32 %v769_v47, %v769_v47  ;;  %v384_v1 = vmul.f32 %v773_v48, %v773_v48 }
  0xf9   :  { %v772_v59 = vadd.f32 %v238_v43, %v218_v57  ;;  %v776_v60 = vadd.f32 %v248_v58, %v208_v44  ;;  %v377_v63 = vmul.f32 %v770_v51, %v770_v51  ;;  %v385_v3 = vmul.f32 %v774_v52, %v774_v52 }
  0xfa   :  { %v380_v62 = vmul.f32 %v771_v55, %v771_v55  ;;  %v388_v5 = vmul.f32 %v775_v56, %v775_v56 }
  0xfb   :  { %v381_v0 = vmul.f32 %v772_v59, %v772_v59  ;;  %v389_v7 = vmul.f32 %v776_v60, %v776_v60 }
  0xfc   :  { %v392_v2 = vadd.f32 %v380_v62, %v376_v61 }
  0xfd   :  { %v401_v4 = vadd.f32 %v381_v0, %v377_v63 }
  0xfe   :  { %v393_v6 = vadd.f32 %v392_v2, %v384_v1 }
  0xff   :  { %v402_v8 = vadd.f32 %v401_v4, %v385_v3 }
 0x100   :  { %v394_v9 = vadd.f32 %v393_v6, %v388_v5 }
 0x101   :  { %v403_v10 = vadd.f32 %v402_v8, %v389_v7 }
 0x102   :  { %v395_v11 = vrot.slane %v394_v9, 4 }
 0x103   :  { %v404_v12 = vrot.slane %v403_v10, 4 }
 0x104   :  { %v396_v13 = vadd.f32 %v395_v11, %v394_v9 }
 0x105   :  { %v405_v14 = vadd.f32 %v404_v12, %v403_v10 }
 0x106   :  { %v397_v15 = vrot.slane %v396_v13, 2 }
 0x107   :  { %v406_v16 = vrot.slane %v405_v14, 2 }
 0x108   :  { %v398_v17 = vadd.f32 %v397_v15, %v396_v13 }
 0x109   :  { %v407_v18 = vadd.f32 %v406_v16, %v405_v14 }
 0x10a   :  { %v399_v19 = vrot.slane %v398_v17, 1 }
 0x10b   :  { %v408_v20 = vrot.slane %v407_v18, 1 }
 0x10c   :  { %v400_v21 = vadd.f32 %v399_v19, %v398_v17 }
 0x10d   :  { %v409_v22 = vadd.f32 %v408_v20, %v407_v18 }
 0x10e   :  { %833 = vrsqrt.f32 %v400_v21 }
 0x10f   :  { %835 = vrsqrt.f32 %v409_v22 }
 0x118   :  { %v834_v23 = vpop.eup %833 }
 0x119   :  { %v836_v24 = vpop.eup %835  ;;  %v432_v25 = vmul.f32 %v834_v23, %v769_v47  ;;  %v436_v26 = vmul.f32 %v834_v23, %v771_v55  ;;  %v440_v27 = vmul.f32 %v834_v23, %v773_v48  ;;  %v444_v28 = vmul.f32 %v834_v23, %v775_v56 }
 0x11a   :  { %v445_v29 = vmul.f32 %v836_v24, %v776_v60  ;;  %v433_v30 = vmul.f32 %v836_v24, %v770_v51  ;;  %v437_v31 = vmul.f32 %v836_v24, %v772_v59  ;;  %v441_v32 = vmul.f32 %v836_v24, %v774_v52 }
 0x11d   :  { %v325_v33 = vpop.f32.mrb[8].mxu1  ;;  %v606_v34 = vpop.f32.mrb[8].mxu0 }
 0x11e   :  { %v641_v35 = vadd.f32 %v606_v34, %v432_v25  ;;  %v966_v36 = vpop.f32.mrb[9].mxu1  ;;  %v968_v37 = vpop.f32.mrb[9].mxu0  ;;  %v378_v40 = vmul.f32 %v325_v33, %v325_v33 }
 0x11f   :  { %v329_v38 = vpop.f32.mrb[10].mxu1  ;;  %v610_v39 = vpop.f32.mrb[10].mxu0  ;;  %v379_v46 = vmul.f32 %v966_v36, %v966_v36 }
 0x120   :  { %v645_v41 = vsub.f32 %v641_v35, %v433_v30  ;;  %v382_v42 = vmul.f32 %v329_v38, %v329_v38  ;;  %v642_v43 = vadd.f32 %v610_v39, %v436_v26  ;;  %v331_v44 = vpop.f32.mrb[11].mxu1  ;;  %v612_v45 = vpop.f32.mrb[11].mxu0 }
 0x121   :  { %v383_v47 = vmul.f32 %v331_v44, %v331_v44 }
 0x122   :  { %v410_v48 = vadd.f32 %v382_v42, %v378_v40  ;;  %v646_v49 = vsub.f32 %v642_v43, %v437_v31  ;;  %v657_v51 = vand.u32 2147483647, %v645_v41 }
 0x123   :  { %v419_v50 = vadd.f32 %v383_v47, %v379_v46 }
 0x124   :  { %v658_v52 = vand.u32 2147483647, %v646_v49 }
 0x125   :  { %v335_v53 = vpop.f32.mrb[12].mxu1  ;;  %v616_v54 = vpop.f32.mrb[12].mxu0 }
 0x126   :  { %v661_v55 = vadd.f32 %v658_v52, %v657_v51  ;;  %v386_v56 = vmul.f32 %v335_v53, %v335_v53  ;;  %v643_v57 = vadd.f32 %v616_v54, %v440_v27  ;;  %v337_v58 = vpop.f32.mrb[13].mxu1  ;;  %v618_v59 = vpop.f32.mrb[13].mxu0 }
 0x127   :  { %v387_v60 = vmul.f32 %v337_v58, %v337_v58  ;;  %v339_v61 = vpop.f32.mrb[14].mxu1  ;;  %v620_v62 = vpop.f32.mrb[14].mxu0 }
 0x128   :  { %v411_v63 = vadd.f32 %v410_v48, %v386_v56  ;;  %v647_v0 = vsub.f32 %v643_v57, %v441_v32  ;;  %v390_v1 = vmul.f32 %v339_v61, %v339_v61  ;;  %v644_v2 = vadd.f32 %v620_v62, %v444_v28  ;;  %v341_v3 = vpop.f32.mrb[15].mxu1  ;;  %v622_v4 = vpop.f32.mrb[15].mxu0 }
 0x129   :  { %v420_v5 = vadd.f32 %v419_v50, %v387_v60  ;;  %v391_v6 = vmul.f32 %v341_v3, %v341_v3 }
 0x12a   :  { %v659_v7 = vand.u32 2147483647, %v647_v0  ;;  %v412_v8 = vadd.f32 %v411_v63, %v390_v1  ;;  %v648_v9 = vsub.f32 %v644_v2, %v445_v29 }
 0x12b   :  { %v421_v10 = vadd.f32 %v420_v5, %v391_v6 }
 0x12c   :  { %v662_v11 = vadd.f32 %v661_v55, %v659_v7  ;;  %v413_v12 = vrot.slane %v412_v8, 4  ;;  %v660_v13 = vand.u32 2147483647, %v648_v9 }
 0x12d   :  { %v422_v14 = vrot.slane %v421_v10, 4 }
 0x12e   :  { %v414_v15 = vadd.f32 %v413_v12, %v412_v8  ;;  %v663_v16 = vadd.f32 %v662_v11, %v660_v13 }
 0x12f   :  { %v423_v17 = vadd.f32 %v422_v14, %v421_v10 }
 0x130   :  { %v415_v18 = vrot.slane %v414_v15, 2  ;;  %v664_v46 = vrot.slane %v663_v16, 4 }
 0x131   :  { %v424_v19 = vrot.slane %v423_v17, 2 }
 0x132   :  { %v416_v20 = vadd.f32 %v415_v18, %v414_v15 }
 0x133   :  { %v425_v21 = vadd.f32 %v424_v19, %v423_v17 }
 0x134   :  { %v417_v22 = vrot.slane %v416_v20, 1 }
 0x135   :  { %v426_v23 = vrot.slane %v425_v21, 1 }
 0x136   :  { %v418_v24 = vadd.f32 %v417_v22, %v416_v20 }
 0x137   :  { %v427_v25 = vadd.f32 %v426_v23, %v425_v21 }
 0x138   :  { %837 = vrsqrt.f32 %v418_v24 }
 0x139   :  { %839 = vrsqrt.f32 %v427_v25 }
 0x142   :  { %v838_v26 = vpop.eup %837 }
 0x143   :  { %v840_v27 = vpop.eup %839  ;;  %v446_v28 = vmul.f32 %v838_v26, %v339_v61  ;;  %v434_v29 = vmul.f32 %v838_v26, %v325_v33  ;;  %v438_v30 = vmul.f32 %v838_v26, %v329_v38  ;;  %v442_v31 = vmul.f32 %v838_v26, %v335_v53 }
 0x144   :  { %v447_v32 = vmul.f32 %v840_v27, %v341_v3  ;;  %v435_v34 = vmul.f32 %v840_v27, %v966_v36  ;;  %v439_v35 = vmul.f32 %v840_v27, %v331_v44  ;;  %v443_v39 = vmul.f32 %v840_v27, %v337_v58 }
 0x145   :  { %v649_v40 = vadd.f32 %v968_v37, %v434_v29  ;;  %v650_v41 = vadd.f32 %v612_v45, %v438_v30  ;;  %v651_v42 = vadd.f32 %v618_v59, %v442_v31  ;;  %v652_v43 = vadd.f32 %v622_v4, %v446_v28 }
 0x146   :  { %v665_v33 = vadd.f32 %v664_v46, %v663_v16 }
 0x147   :  { %v653_v47 = vsub.f32 %v649_v40, %v435_v34  ;;  %v654_v48 = vsub.f32 %v650_v41, %v439_v35  ;;  %v655_v49 = vsub.f32 %v651_v42, %v443_v39  ;;  %v656_v50 = vsub.f32 %v652_v43, %v447_v32 }
 0x148   :  { %v666_v36 = vrot.slane %v665_v33, 2 }
 0x149   :  { %v670_v51 = vand.u32 2147483647, %v653_v47  ;;  %v671_v52 = vand.u32 2147483647, %v654_v48  ;;  %v672_v38 = vand.u32 2147483647, %v655_v49 }
 0x14a   :  { %v673_v54 = vand.u32 2147483647, %v656_v50  ;;  %v667_v37 = vadd.f32 %v666_v36, %v665_v33 }
 0x14b   :  { %v674_v53 = vadd.f32 %v671_v52, %v670_v51 }
 0x14c   :  { %v668_v58 = vrot.slane %v667_v37, 1 }
 0x14d   :  { %v675_v55 = vadd.f32 %v674_v53, %v672_v38 }
 0x14e   :  { %v669_v61 = vadd.f32 %v668_v58, %v667_v37 }
 0x14f   :  { %v676_v44 = vadd.f32 %v675_v55, %v673_v54 }
 0x151   :  { %v677_v56 = vrot.slane %v676_v44, 4 }
 0x153   :  { %v678_v57 = vadd.f32 %v677_v56, %v676_v44 }
 0x155   :  { %v679_v45 = vrot.slane %v678_v57, 2 }
 0x157   :  { %v680_v59 = vadd.f32 %v679_v45, %v678_v57 }
 0x159   :  { %v681_v60 = vrot.slane %v680_v59, 1 }
 0x15b   :  { %v682_v62 = vadd.f32 %v681_v60, %v680_v59 }
 0x15d   :  { %v684_v63 = vsel %vm683_vm13, %v669_v61, %v682_v62 }
 0x15e   :  { %685 = vst [vmem:[#allocation2] sm:$0x3] %v684_v63 }
 0x15f   :  { %852 = shalt.err (!%p849_p4)
}
 0x160   :  { %s853_s13 = scalar_lea.hbm %s989_s3, 32 }
 0x161   :  { %p854_p5 = scmp.ne.s32.totalorder %s989_s3, %s853_s13  ;;  %p857_p6 = scmp.lt.u32.totalorder %s853_s13, %s989_s3 }
 0x163   :  { %p859_p7 = pnand %p857_p6, %p854_p5 }
 0x165   :  { %862 = shalt.err (!%p859_p7)
}
 0x166   :  { %695 = dma.vmem_to_hbm [thread:$0]  %s693_s9, 32, %s989_s3, [#allocation3]  }
 0x167   :  { %863 = dma.done.wait [#allocation3], 32  }
 0x168   :  { %864 = vsyncadd [#allocation3], 4294967264 }
 0x169   :  { %699 = vsyncpa [#allocation3], 1 }

</bundles_post_ra>
